<compile_context>
chip_gen: v7x
topology: tpu7x:2x2x1
jax: 0.10.0
libtpu: 0.0.40
codegen_flags: <defaults>
</compile_context>

<pallas_src>
import functools

import jax
import jax.numpy as jnp
import numpy as np
from jax import lax
from jax.experimental import pallas as pl
from jax.experimental.pallas import tpu as pltpu


# ----------------------------------------------------------------------------
# Kernel A: ConvTranspose2d(kernel=2, stride=2) has non-overlapping outputs,
# so it is a pure matmul.  Per grid step (one batch, one strip of RH input
# rows) we compute  [RH*W, Cin] @ [Cin, 2*Cout]  once per output-row parity
# dh in {0,1} and store into an output laid out as [B, H, 2, W, 2*Cout];
# reshaping that to [B, 2H, 2W, Cout] in the wrapper is free (row-major).
# ----------------------------------------------------------------------------
def _up_kernel(x_ref, w_ref, b_ref, o_ref):
    # x_ref: [1, RH, W, Cin]   w_ref: [2, Cin, 2*Cout]   b_ref: [1, 2*Cout]
    # o_ref: [1, RH, 2, W, 2*Cout]
    _, RH, W, Cin = x_ref.shape
    C2 = w_ref.shape[2]                                   # 2*Cout
    x = x_ref[0].reshape(RH * W, Cin)
    for dh in range(2):                                   # 2 output-row parities
        y = jnp.dot(x, w_ref[dh], preferred_element_type=jnp.float32) + b_ref[...]
        o_ref[0, :, dh:dh + 1, :, :] = y.reshape(RH, 1, W, C2).astype(o_ref.dtype)


# ----------------------------------------------------------------------------
# Kernel B: ConvBlock = (3x3 conv, pad=1, no bias) + ReLU, twice.
# One grid step per batch element.  The concat is never built: conv1 is
# accumulated from the `up` channels and the `skip` channels separately.
# Each conv is computed over strips of R output rows -> tap matmuls with
# M = R*WW.  Padding lives only in zero-bordered VMEM scratches.
# ----------------------------------------------------------------------------
def _zero_border(ref):
    P, Q, C = ref.shape
    z_row = jnp.zeros((1, Q, C), ref.dtype)
    z_col = jnp.zeros((P, 1, C), ref.dtype)
    ref[0:1, :, :] = z_row
    ref[P - 1:P, :, :] = z_row
    ref[:, 0:1, :] = z_col
    ref[:, Q - 1:Q, :] = z_col


def _conv_block_kernel(up_ref, skip_ref, w1u_ref, w1s_ref, w2_ref, o_ref,
                       up_pad, skip_pad, h_pad, *, rows_per_strip):
    # up_ref:   [1, HH, WW, Cout]      skip_ref: [1, HH, WW, Cskip]
    # w1u_ref:  [9, Cout, Cout]        w1s_ref:  [9, Cskip, Cout]
    # w2_ref:   [9, Cout, Cout]        o_ref:    [1, HH, WW, Cout]
    # scratches: zero-bordered padded tiles (HH+2, WW+2, C)
    HH, WW, Cout = o_ref.shape[1], o_ref.shape[2], o_ref.shape[3]
    Cup = up_pad.shape[2]
    Csk = skip_pad.shape[2]
    R = rows_per_strip
    n_strips = HH // R

    # Only the 1-px border ring needs zeroing; interiors are fully overwritten.
    _zero_border(up_pad)
    _zero_border(skip_pad)
    _zero_border(h_pad)

    # Stage inputs into the padded scratches (the "concat" never materializes).
    up_pad[1:HH + 1, 1:WW + 1, :] = up_ref[0]
    skip_pad[1:HH + 1, 1:WW + 1, :] = skip_ref[0]

    # ---- conv1 + ReLU, strip-batched: M = R*WW per tap matmul ----
    def conv1_body(i, carry):
        h0 = i * R
        acc = jnp.zeros((R * WW, Cout), jnp.float32)
        for t in range(9):                                 # 9 taps, unrolled
            dh, dw = t // 3, t % 3
            a = up_pad[pl.ds(h0 + dh, R), pl.ds(dw, WW), :].reshape(R * WW, Cup)
            acc = acc + jnp.dot(a, w1u_ref[t], preferred_element_type=jnp.float32)
            s = skip_pad[pl.ds(h0 + dh, R), pl.ds(dw, WW), :].reshape(R * WW, Csk)
            acc = acc + jnp.dot(s, w1s_ref[t], preferred_element_type=jnp.float32)
        h_pad[pl.ds(h0 + 1, R), 1:WW + 1, :] = (
            jnp.maximum(acc, 0.0).reshape(R, WW, Cout).astype(h_pad.dtype))
        return carry

    lax.fori_loop(0, n_strips, conv1_body, 0)

    # ---- conv2 + ReLU ----
    def conv2_body(i, carry):
        h0 = i * R
        acc = jnp.zeros((R * WW, Cout), jnp.float32)
        for t in range(9):
            dh, dw = t // 3, t % 3
            h = h_pad[pl.ds(h0 + dh, R), pl.ds(dw, WW), :].reshape(R * WW, Cout)
            acc = acc + jnp.dot(h, w2_ref[t], preferred_element_type=jnp.float32)
        o_ref[0, pl.ds(h0, R), :, :] = (
            jnp.maximum(acc, 0.0).reshape(R, WW, Cout).astype(o_ref.dtype))
        return carry

    lax.fori_loop(0, n_strips, conv2_body, 0)


# ----------------------------------------------------------------------------
# Helpers / wrapper
# ----------------------------------------------------------------------------
def _pick_rows(n_rows, row_width, target):
    """Largest divisor of n_rows with rows*row_width roughly <= target."""
    r = max(1, min(n_rows, target // max(row_width, 1)))
    while n_rows % r:
        r -= 1
    return r


def decoder_block_forward(x_nchw, skip_nchw, params, *, compute_dtype=jnp.float32):
    wt, bt = params["up_w"], params["up_b"]           # [Cin, Cout, 2, 2], [Cout]
    w1, w2 = params["conv1_w"], params["conv2_w"]     # [Cout, C1, 3, 3], [Cout, Cout, 3, 3]

    B, Cin, H, W = x_nchw.shape
    Cout = wt.shape[1]
    Cskip = skip_nchw.shape[1]
    HH, WW = 2 * H, 2 * W
    assert w1.shape[1] == Cout + Cskip, "conv1 in-channels must equal Cout + Cskip"

    cdt = compute_dtype
    csize = np.dtype(cdt).itemsize

    # ---- layout prep (one cheap pass each; in a real NHWC pipeline these go away) ----
    x_nhwc = jnp.transpose(x_nchw, (0, 2, 3, 1)).astype(cdt)          # [B,H,W,Cin]
    skip_nhwc = jnp.transpose(skip_nchw, (0, 2, 3, 1)).astype(cdt)    # [B,HH,WW,Cskip]

    # up weights -> [2(dh), Cin, 2*Cout] with column = dw*Cout + co
    wt3 = jnp.transpose(wt, (2, 0, 3, 1)).reshape(2, Cin, 2 * Cout).astype(cdt)
    b2 = jnp.tile(bt, 2)[None, :].astype(jnp.float32)                 # [1, 2*Cout]

    # conv weights, tap-major [9, Cin_tap, Cout]; conv1 split by concat source
    w1u_k = jnp.transpose(w1[:, :Cout], (2, 3, 1, 0)).reshape(9, Cout, Cout).astype(cdt)
    w1s_k = jnp.transpose(w1[:, Cout:], (2, 3, 1, 0)).reshape(9, Cskip, Cout).astype(cdt)
    w2_k = jnp.transpose(w2, (2, 3, 1, 0)).reshape(9, Cout, Cout).astype(cdt)

    # ---- Kernel A: transposed conv as row-strip matmuls ----
    RH = _pick_rows(H, W, target=512)                 # strip of input rows, M = RH*W
    cost_a = pl.CostEstimate(
        flops=2 * B * H * W * Cin * 4 * Cout,
        transcendentals=0,
        bytes_accessed=csize * (B * H * W * Cin + 2 * Cin * 2 * Cout
                                + B * H * W * 4 * Cout) + 4 * 2 * Cout)

    up5 = pl.pallas_call(
        _up_kernel,
        out_shape=jax.ShapeDtypeStruct((B, H, 2, W, 2 * Cout), cdt),
        grid=(B, H // RH),
        in_specs=[
            pl.BlockSpec((1, RH, W, Cin), lambda b, r: (b, r, 0, 0)),
            pl.BlockSpec((2, Cin, 2 * Cout), lambda b, r: (0, 0, 0)),
            pl.BlockSpec((1, 2 * Cout), lambda b, r: (0, 0)),
        ],
        out_specs=pl.BlockSpec((1, RH, 2, W, 2 * Cout), lambda b, r: (b, r, 0, 0, 0)),
        compiler_params=pltpu.CompilerParams(
            dimension_semantics=("parallel", "parallel")),
        cost_estimate=cost_a,
    )(x_nhwc, wt3, b2)

    # free (metadata-only) reshape: [B,H,2,W,2*Cout] -> [B,2H,2W,Cout]
    up_nhwc = up5.reshape(B, HH, WW, Cout)

    # ---- Kernel B: fused pad + (conv3x3+ReLU) x2, per batch element ----
    R = _pick_rows(HH, WW, target=256)                # output rows per strip matmul
    flops_b = 2 * 9 * B * HH * WW * Cout * (Cout + Cskip + Cout)
    bytes_b = (csize * (B * HH * WW * (Cout + Cskip)
                        + 9 * (Cout * Cout + Cskip * Cout + Cout * Cout))
               + 4 * B * HH * WW * Cout)
    cost_b = pl.CostEstimate(flops=flops_b, transcendentals=0, bytes_accessed=bytes_b)

    kernel_b = functools.partial(_conv_block_kernel, rows_per_strip=R)
    out_nhwc = pl.pallas_call(
        kernel_b,
        out_shape=jax.ShapeDtypeStruct((B, HH, WW, Cout), jnp.float32),
        grid=(B,),
        in_specs=[
            pl.BlockSpec((1, HH, WW, Cout), lambda b: (b, 0, 0, 0)),
            pl.BlockSpec((1, HH, WW, Cskip), lambda b: (b, 0, 0, 0)),
            pl.BlockSpec((9, Cout, Cout), lambda b: (0, 0, 0)),
            pl.BlockSpec((9, Cskip, Cout), lambda b: (0, 0, 0)),
            pl.BlockSpec((9, Cout, Cout), lambda b: (0, 0, 0)),
        ],
        out_specs=pl.BlockSpec((1, HH, WW, Cout), lambda b: (b, 0, 0, 0)),
        scratch_shapes=[
            pltpu.VMEM((HH + 2, WW + 2, Cout), cdt),    # padded up tile
            pltpu.VMEM((HH + 2, WW + 2, Cskip), cdt),   # padded skip tile
            pltpu.VMEM((HH + 2, WW + 2, Cout), cdt),    # padded conv1 output
        ],
        compiler_params=pltpu.CompilerParams(dimension_semantics=("parallel",)),
        cost_estimate=cost_b,
    )(up_nhwc, skip_nhwc, w1u_k, w1s_k, w2_k)

    return jnp.transpose(out_nhwc, (0, 3, 1, 2))      # back to NCHW


# ----------------------------------------------------------------------------
# Pure-JAX reference (same semantics as the PyTorch module) for verification.
# ----------------------------------------------------------------------------
def decoder_block_reference(x, skip, params):
    wt, bt = params["up_w"], params["up_b"]
    w1, w2 = params["conv1_w"], params["conv2_w"]
    B, Cin, H, W = x.shape
    Cout = wt.shape[1]
    up = jnp.einsum("bchw,cokl->bohkwl", x, wt).reshape(B, Cout, 2 * H, 2 * W)
    up = up + bt[None, :, None, None]
    y = jnp.concatenate([up, skip], axis=1)
    dn = ("NCHW", "OIHW", "NCHW")
    h = jax.nn.relu(lax.conv_general_dilated(y, w1, (1, 1), ((1, 1), (1, 1)),
                                             dimension_numbers=dn))
    o = jax.nn.relu(lax.conv_general_dilated(h, w2, (1, 1), ((1, 1), (1, 1)),
                                             dimension_numbers=dn))
    return o


if __name__ == "__main__":
    B, in_channels, out_channels, H, W = 2, 8, 4, 8, 8   # skip is [B, out, 2H, 2W]

    key = jax.random.PRNGKey(0)
    kx, ks, k1, k2, k3, k4 = jax.random.split(key, 6)

    x = jax.random.normal(kx, (B, in_channels, H, W), jnp.float32)
    skip = jax.random.normal(ks, (B, out_channels, 2 * H, 2 * W), jnp.float32)

    params = {
        # ConvTranspose2d(in, out, k=2, s=2): weight [in, out, 2, 2], bias [out]
        "up_w": 0.1 * jax.random.normal(k1, (in_channels, out_channels, 2, 2), jnp.float32),
        "up_b": 0.1 * jax.random.normal(k2, (out_channels,), jnp.float32),
        # ConvBlock(in, out): conv1 [out, in, 3, 3], conv2 [out, out, 3, 3], no bias
        "conv1_w": 0.1 * jax.random.normal(k3, (out_channels, in_channels, 3, 3), jnp.float32),
        "conv2_w": 0.1 * jax.random.normal(k4, (out_channels, out_channels, 3, 3), jnp.float32),
    }

    out = jax.block_until_ready(decoder_block_forward(x, skip, params))
    ref = jax.block_until_ready(decoder_block_reference(x, skip, params))

    assert out.shape == (B, out_channels, 2 * H, 2 * W), out.shape
    assert jnp.allclose(out, ref, rtol=1e-4, atol=1e-4), \
        f"max abs diff {jnp.max(jnp.abs(out - ref))}"

    print("KERNEL_OK")
</pallas_src>

<mosaic_0001>
module attributes {stable_mosaic.version = 11 : i64} {
  func.func @_up_kernel(%arg0: i32, %arg1: i32, %arg2: memref<1x8x8x8xf32, #tpu.memory_space<vmem>>, %arg3: memref<2x8x8xf32, #tpu.memory_space<vmem>>, %arg4: memref<1x8xf32, #tpu.memory_space<vmem>>, %arg5: memref<1x8x2x8x8xf32, #tpu.memory_space<vmem>>) attributes {dimension_semantics = [#tpu.dimension_semantics<parallel>, #tpu.dimension_semantics<parallel>], iteration_bounds = array<i64: 2, 1>, scalar_prefetch = 0 : i64, scratch_operands = 0 : i64, tpu.core_type = #tpu.core_type<tc>, window_params = [{transform_indices = @transform_0, window_bounds = array<i64: 1, 8, 8, 8>}, {pipeline_mode = #tpu.pipeline_mode<synchronous>, transform_indices = @transform_1, window_bounds = array<i64: 2, 8, 8>}, {pipeline_mode = #tpu.pipeline_mode<synchronous>, transform_indices = @transform_2, window_bounds = array<i64: 1, 8>}, {transform_indices = @transform_3, window_bounds = array<i64: 1, 8, 2, 8, 8>}]} {
    %c0 = arith.constant 0 : index
    %c0_0 = arith.constant 0 : index
    %c0_1 = arith.constant 0 : index
    %c0_2 = arith.constant 0 : index
    %0 = vector.load %arg2[%c0, %c0_0, %c0_1, %c0_2] : memref<1x8x8x8xf32, #tpu.memory_space<vmem>>, vector<1x8x8x8xf32>
    %1 = vector.shape_cast %0 : vector<1x8x8x8xf32> to vector<8x8x8xf32>
    %2 = vector.shape_cast %1 : vector<8x8x8xf32> to vector<64x8xf32>
    %c0_3 = arith.constant 0 : index
    %c0_4 = arith.constant 0 : index
    %c0_5 = arith.constant 0 : index
    %3 = vector.load %arg3[%c0_3, %c0_4, %c0_5] : memref<2x8x8xf32, #tpu.memory_space<vmem>>, vector<1x8x8xf32>
    %4 = vector.shape_cast %3 : vector<1x8x8xf32> to vector<8x8xf32>
    %cst = arith.constant dense<0.000000e+00> : vector<64x8xf32>
    %5 = tpu.matmul %2, %4, %cst {dimension_numbers = #tpu.dot_dimension_numbers<[1], [0], [0], [1], [0, 0, 1, 1], [], []>} : vector<64x8xf32>, vector<8x8xf32>, vector<64x8xf32> -> vector<64x8xf32>
    %c0_6 = arith.constant 0 : index
    %c0_7 = arith.constant 0 : index
    %6 = vector.load %arg4[%c0_6, %c0_7] : memref<1x8xf32, #tpu.memory_space<vmem>>, vector<1x8xf32>
    %7 = vector.broadcast %6 : vector<1x8xf32> to vector<64x8xf32>
    %8 = arith.addf %5, %7 : vector<64x8xf32>
    %9 = vector.shape_cast %8 : vector<64x8xf32> to vector<8x1x8x8xf32>
    %c0_8 = arith.constant 0 : index
    %c0_9 = arith.constant 0 : index
    %c0_10 = arith.constant 0 : index
    %c0_11 = arith.constant 0 : index
    %c0_12 = arith.constant 0 : index
    %10 = vector.load %arg5[%c0_8, %c0_9, %c0_10, %c0_11, %c0_12] : memref<1x8x2x8x8xf32, #tpu.memory_space<vmem>>, vector<1x8x1x8x8xf32>
    %11 = vector.shape_cast %10 : vector<1x8x1x8x8xf32> to vector<8x1x8x8xf32>
    %12 = vector.shape_cast %9 : vector<8x1x8x8xf32> to vector<1x8x1x8x8xf32>
    tpu.vector_store %arg5[%c0_8, %c0_9, %c0_10, %c0_11, %c0_12], %12 {strides = array<i32>} : memref<1x8x2x8x8xf32, #tpu.memory_space<vmem>>, vector<1x8x1x8x8xf32>,
    %c1 = arith.constant 1 : index
    %c0_13 = arith.constant 0 : index
    %c0_14 = arith.constant 0 : index
    %13 = vector.load %arg3[%c1, %c0_13, %c0_14] : memref<2x8x8xf32, #tpu.memory_space<vmem>>, vector<1x8x8xf32>
    %14 = vector.shape_cast %13 : vector<1x8x8xf32> to vector<8x8xf32>
    %cst_15 = arith.constant dense<0.000000e+00> : vector<64x8xf32>
    %15 = tpu.matmul %2, %14, %cst_15 {dimension_numbers = #tpu.dot_dimension_numbers<[1], [0], [0], [1], [0, 0, 1, 1], [], []>} : vector<64x8xf32>, vector<8x8xf32>, vector<64x8xf32> -> vector<64x8xf32>
    %c0_16 = arith.constant 0 : index
    %c0_17 = arith.constant 0 : index
    %16 = vector.load %arg4[%c0_16, %c0_17] : memref<1x8xf32, #tpu.memory_space<vmem>>, vector<1x8xf32>
    %17 = vector.broadcast %16 : vector<1x8xf32> to vector<64x8xf32>
    %18 = arith.addf %15, %17 : vector<64x8xf32>
    %19 = vector.shape_cast %18 : vector<64x8xf32> to vector<8x1x8x8xf32>
    %c0_18 = arith.constant 0 : index
    %c0_19 = arith.constant 0 : index
    %c1_20 = arith.constant 1 : index
    %c0_21 = arith.constant 0 : index
    %c0_22 = arith.constant 0 : index
    %20 = vector.load %arg5[%c0_18, %c0_19, %c1_20, %c0_21, %c0_22] : memref<1x8x2x8x8xf32, #tpu.memory_space<vmem>>, vector<1x8x1x8x8xf32>
    %21 = vector.shape_cast %20 : vector<1x8x1x8x8xf32> to vector<8x1x8x8xf32>
    %22 = vector.shape_cast %19 : vector<8x1x8x8xf32> to vector<1x8x1x8x8xf32>
    tpu.vector_store %arg5[%c0_18, %c0_19, %c1_20, %c0_21, %c0_22], %22 {strides = array<i32>} : memref<1x8x2x8x8xf32, #tpu.memory_space<vmem>>, vector<1x8x1x8x8xf32>,
    return
  }
  func.func @transform_0(%arg0: i32, %arg1: i32) -> (i32, i32, i32, i32) {
    %c0_i32 = arith.constant 0 : i32
    %c0_i32_0 = arith.constant 0 : i32
    %c0_i32_1 = arith.constant 0 : i32
    return %arg0, %arg1, %c0_i32, %c0_i32_0 : i32, i32, i32, i32
  }
  func.func @transform_1(%arg0: i32, %arg1: i32) -> (i32, i32, i32) {
    %c0_i32 = arith.constant 0 : i32
    %c0_i32_0 = arith.constant 0 : i32
    %c0_i32_1 = arith.constant 0 : i32
    %c0_i32_2 = arith.constant 0 : i32
    return %c0_i32, %c0_i32_0, %c0_i32_1 : i32, i32, i32
  }
  func.func @transform_2(%arg0: i32, %arg1: i32) -> (i32, i32) {
    %c0_i32 = arith.constant 0 : i32
    %c0_i32_0 = arith.constant 0 : i32
    %c0_i32_1 = arith.constant 0 : i32
    return %c0_i32, %c0_i32_0 : i32, i32
  }
  func.func @transform_3(%arg0: i32, %arg1: i32) -> (i32, i32, i32, i32, i32) {
    %c0_i32 = arith.constant 0 : i32
    %c0_i32_0 = arith.constant 0 : i32
    %c0_i32_1 = arith.constant 0 : i32
    %c0_i32_2 = arith.constant 0 : i32
    return %arg0, %arg1, %c0_i32, %c0_i32_0, %c0_i32_1 : i32, i32, i32, i32, i32
  }
}

</mosaic_0001>

<bundles_post_ra>
// kernel: tpu_custom_call.1
= control target key start
LH: loop header
LB: loop body
LE: loop exit
PB: predicated region body
PF: predicated region fallthrough
CT: control target
= control target key end

     0   :  { %8 = vsyncpa [#allocation3], 0  ;;  %s1246_s0 = inlined_call_operand.hbm [shape: f32[2,8,8,8], index: 0, kind: input, shape index: {}]   ;;  %s1247_s1 = inlined_call_operand.hbm [shape: f32[2,8,8], index: 1, kind: input, shape index: {}]   ;;  %s1248_s2 = inlined_call_operand.vmem [shape: f32[1,8], index: 2, kind: input, shape index: {}]   ;;  %s1249_s3 = inlined_call_operand.hbm [shape: f32[2,8,2,8,8], index: 3, kind: output, shape index: {}]  }
   0x1   :  { %10 = vsyncpa [#allocation3 + $0x1], 0 }
   0x2   :  { %11 = vsyncpa [#allocation6], 0 }
   0x3   :  { %12 = vsyncpa [#allocation4], 0 }
   0x4   :  { %14 = vsyncpa [#allocation4 + $0x1], 0  ;;  %s956_s12 = smov 0   ;;  %s958_s13 = smov 0  }
   0x5   :  { %s960_s14 = smov 0   ;;  %s962_s15 = smov 0  }
   0x6   :  { %s964_s16 = smov 0   ;;  %s966_s17 = smov 0  }
   0x7 LB: > { %s615_s18 = sadd.s32 4294967295, %s927_s17   ;;  %s616_s19 = sadd.s32 4294967294, %s927_s17   ;;  %s927_s17 = sphi %s966_s17, %s20_s17   ;;  %s923_s16 = sphi %s964_s16, %s1273_s16   ;;  %s919_s15 = sphi %s962_s15, %s1272_s15   ;;  %s915_s14 = sphi %s960_s14, %s1271_s14   ;;  %s911_s13 = sphi %s958_s13, %s1270_s13   ;;  %s907_s12 = sphi %s956_s12, %s1269_s12  }
   0x8   : > { %p54_p0 = scmp.ne.s32.totalorder %s911_s13, %s907_s12  ;;  %p990_p1 = scmp.eq.s32.totalorder %s615_s18, 0 }
   0x9   : > { %p994_p2 = scmp.eq.s32.totalorder %s615_s18, 1  ;;  %p128_p3 = scmp.eq.s32.totalorder %s616_s19, 1 }
   0xa   : > { %s1254_s20 = scalar_select %p990_p1, 1, 0 }
   0xb   : > { %s1255_s21 = scalar_select %p994_p2, 1, 0 }
   0xc   : > { %p1000_p4 = por %p990_p1, %p54_p0  ;;  %p617_p5 = scmp.ge.s32.totalorder %s927_s17, 1 }
   0xd   : > { %p1005_p6 = por %p128_p3, %p54_p0  ;;  %p135_p7 = scmp.lt.s32.totalorder %s927_s17, 3 }
   0xe   : > { %s1256_s22 = scalar_select %p1000_p4, 1, 0 }
   0xf   : > { %s1257_s23 = scalar_select %p1005_p6, 1, 0 }
  0x10   : > { %p1010_p8 = pnand %p617_p5, %p135_p7  ;;  %s929_s25 = smov [#allocation5]  }
  0x11   : > { %s147_s26 = sshll.u32 %s929_s25, 4  ;;  %s32_s28 = sadd.s32 1, %s923_s16  ;;  %s148_s26 = int_to_ptr.vmem [resolvable:$true] %s147_s26 }
  0x12   : > { %s1258_s24 = scalar_select %p1010_p8, 1, 0 }
  0x13   : > { %p714_p9 = pneg %p1010_p8  ;;  %s783_s4 = scalar_lea.hbm %s1247_s1, 256 }
  0x14   : > { %p784_p12 = scmp.ne.s32.totalorder %s1247_s1, %s783_s4  ;;  %p790_p5 = scmp.lt.u32.totalorder %s783_s4, %s1247_s1 }
  0x15   : > { %p1019_p11 = pnand %p714_p9, %p990_p1 }
  0x17   : > { %p785_p13 = pneg %p1019_p11 }
  0x19   : > { %p786_p0 = pnand %p785_p13, %p784_p12 }
  0x1b   : > { %p787_p3 = pneg %p786_p0 }
  0x1d   : > { %p792_p7 = pnand %p790_p5, %p787_p3 }
  0x1f   : > { %795 = shalt.err (!%p792_p7)
}
  0x20   : > { %s796_s9 = scalar_lea.vmem %s148_s26, 256  ;;  %p804_p1 = scmp.lt.s32.totalorder %s148_s26, %s148_s26 }
  0x21   : > { %p797_p9 = scmp.ne.s32.totalorder %s148_s26, %s796_s9  ;;  %p805_p4 = scmp.lt.s32.totalorder %s796_s9, %s796_s9 }
  0x23   : > { %p799_p10 = pnand %p797_p9, %p785_p13  ;;  %p806_p8 = por %p805_p4, %p804_p1 }
  0x25   : > { %p800_p6 = pneg %p799_p10 }
  0x27   : > { %p807_p2 = pnand %p806_p8, %p800_p6 }
  0x29   : > { %810 = shalt.err (!%p807_p2)
}
  0x2a   : > { %s930_s10 = smov 128   ;;  %s931_s11 = smov 8  }
  0x2b   : > { %717 = dma.hbm_to_vmem [thread:$0]  (!%p1019_p11), %s1247_s1, 256, %s148_s26, [#allocation6], %s930_s10, %s930_s10, %s931_s11  }
  0x2c   : > { %p34_p1 = scmp.ge.s32.totalorder %s32_s28, 2  ;;  %s41_s25 = sadd.s32 1, %s915_s14 }
  0x2d   : > { %p48_p2 = scmp.ne.s32.totalorder %s915_s14, %s911_s13  ;;  %p49_p4 = scmp.eq.s32.totalorder %s927_s17, 0 }
  0x2e   : > { %s1275_s28 = smov (%p34_p1, %s32_s28), 0  ;;  %p1261_p8 = scmp.ne.s32.totalorder %s1255_s21, 0 }
  0x2f   : > { %p1049_p6 = por %p49_p4, %p48_p2  ;;  %s36_s30 = ssub.s32 %s923_s16, %s1275_s28 }
  0x30   : > { %p1055_p10 = por %p1261_p8, %p48_p2  ;;  %p727_p12 = scmp.lt.s32.totalorder %s927_s17, 2 }
  0x31   : > { %p39_p11 = scmp.eq.s32.totalorder %s36_s30, 0  ;;  %s164_s26 = sand.u32 1, %s915_s14  }
  0x32   : > { %s620_s4 = sshll.u32 %s164_s26, 6  ;;  %s658_s6 = sshll.u32 %s923_s16, 10 }
  0x33   : > { %s1064_s5 = scalar_select %p39_p11, %s915_s14, %s41_s25  }
  0x34   : > { %s1070_s9 = scalar_lea.hbm %s1246_s0, %s658_s6  ;;  %s168_s21 = scalar_lea.vmem [#allocation2], %s620_s4 }
  0x35   : > { %s177_s18 = sshll.u32 %s168_s21, 4  ;;  %p1076_p13 = pnand %p727_p12, %p1049_p6  ;;  %s1072_s18 = int_to_ptr.vmem [resolvable:$true] %s177_s18 }
  0x36   : > { %s1080_s25 = scalar_lea.sflag [#allocation3], %s164_s26  ;;  %s811_s30 = scalar_lea.hbm %s1070_s9, 1024 }
  0x37   : > { %p812_p0 = scmp.ne.s32.totalorder %s1070_s9, %s811_s30  ;;  %p813_p3 = pneg %p1076_p13 }
  0x38   : > { %s816_s29 = scalar_lea.hbm %s1246_s0, 2048  ;;  %p817_p9 = scmp.lt.u32.totalorder %s1070_s9, %s1246_s0 }
  0x39   : > { %p814_p5 = pnand %p813_p3, %p812_p0  ;;  %p818_p1 = scmp.lt.u32.totalorder %s816_s29, %s811_s30 }
  0x3a   : > { %p820_p4 = scmp.lt.u32.totalorder %s811_s30, %s1070_s9 }
  0x3b   : > { %p815_p7 = pneg %p814_p5  ;;  %p819_p2 = por %p818_p1, %p817_p9 }
  0x3d   : > { %p821_p6 = por %p820_p4, %p819_p2 }
  0x3f   : > { %p822_p8 = pnand %p821_p6, %p815_p7 }
  0x41   : > { %825 = shalt.err (!%p822_p8)
}
  0x42   : > { %s826_s26 = scalar_lea.vmem %s1072_s18, 1024  ;;  %s932_s21 = smov [#allocation2]  }
  0x43   : > { %p827_p12 = scmp.ne.s32.totalorder %s1072_s18, %s826_s26  ;;  %s831_s4 = sshll.u32 %s932_s21, 4  ;;  %s832_s4 = int_to_ptr.vmem [resolvable:$false] %s831_s4 }
  0x44   : > { %s833_s6 = scalar_lea.vmem %s832_s4, 2048  ;;  %p834_p5 = scmp.lt.s32.totalorder %s1072_s18, %s832_s4 }
  0x45   : > { %p829_p11 = pnand %p827_p12, %p813_p3  ;;  %p835_p9 = scmp.lt.s32.totalorder %s833_s6, %s826_s26 }
  0x47   : > { %p830_p0 = pneg %p829_p11  ;;  %p836_p1 = por %p835_p9, %p834_p5 }
  0x49   : > { %p837_p2 = pnand %p836_p1, %p830_p0 }
  0x4b   : > { %840 = shalt.err (!%p837_p2)
}
  0x4c   : > { %721 = dma.hbm_to_vmem [thread:$0]  (!%p1076_p13), %s1070_s9, 1024, %s1072_s18, %s1080_s25, %s930_s10, %s930_s10, %s931_s11  }
  0x4d   : > { %p1264_p3 = scmp.ne.s32.totalorder %s1258_s24, 0 }
  0x4e   : > { %s1114_s30 = sand.u32 (!%p1264_p3), 1, %s911_s13   ;;  %p1265_p7 = scmp.ne.s32.totalorder (!%p1264_p3), %s1256_s22, 0 }
  0x4f   : > { %189 = sbr.rel (%p1264_p3) target bundleno = 336 (0x150), region = 32  ;;  %s624_s29 = sshll.u32 (!%p1264_p3), %s1114_s30, 6 }
  0x50   : > { %s192_s7 = scalar_lea.sflag (!%p1264_p3), [#allocation3], %s1114_s30  ;;  %s1118_s8 = scalar_lea.vmem (!%p1264_p3), [#allocation2], %s624_s29 }
  0x56   : > { %894 = dma.done.wait (%p1265_p7), %s192_s7, 1024  }
  0x57   : > { %896 = vsyncadd (%p1265_p7), %s192_s7, 4294966272  ;;  %p1266_p13 = scmp.ne.s32.totalorder %s1254_s20, 0 }
  0x59   : > { %898 = dma.done.wait (%p1266_p13), [#allocation6], 256  }
  0x5a   : > { %900 = vsyncadd (%p1266_p13), [#allocation6], 4294967040  ;;  %vm240_vm0 = vcmask 64512   ;;  %v232_v0 = vld [vmem:[#allocation5] sm:$0xff]  ;;  %v379_v1 = vld [vmem:[#allocation5 + $0x8] sm:$0xff]  ;;  %s626_s20 = sshll.u32 %s1114_s30, 7 }
  0x5b   : > { %v224_v2 = vld [vmem:[%s1118_s8] sm:$0xff]  ;;  %678 = vmatprep.subr.mxu0 %v232_v0  ;;  %692 = vmatprep.subr.mxu1 %v379_v1  ;;  %v225_v3 = vld [vmem:[%s1118_s8 + $0x8] sm:$0xff]  ;;  %v226_v4 = vld [vmem:[%s1118_s8 + $0x10] sm:$0xff]  ;;  %s1156_s10 = scalar_lea.vmem [#allocation7], %s626_s20  ;;  %s659_s11 = sshll.u32 %s919_s15, 11 }
  0x5c   : > { %679 = vmatpush3.msra.mxu0 %v232_v0  ;;  %680 = vmatprep.mubr.msk.f32.mxu0 %vm240_vm0, %v224_v2  ;;  %v227_v5 = vld [vmem:[%s1118_s8 + $0x18] sm:$0xff]  ;;  %v228_v6 = vld [vmem:[%s1118_s8 + $0x20] sm:$0xff]  ;;  %v229_v7 = vld [vmem:[%s1118_s8 + $0x28] sm:$0xff]  ;;  %s518_s9 = sshll.u32 %s1156_s10, 4  ;;  %s1187_s19 = scalar_lea.hbm %s1249_s3, %s659_s11  ;;  %s1189_s9 = int_to_ptr.vmem [resolvable:$true] %s518_s9 }
  0x5d   : > { %693 = vmatpush3.msra.mxu1 %v379_v1  ;;  %694 = vmatprep.mubr.msk.f32.mxu1 %vm240_vm0, %v224_v2  ;;  %v230_v8 = vld [vmem:[%s1118_s8 + $0x30] sm:$0xff]  ;;  %v231_v9 = vld [vmem:[%s1118_s8 + $0x38] sm:$0xff]  ;;  %v627_v10 = vld [vmem:[%s1248_s2] ss:$0 sm:$0xff]  ;;  %s502_s25 = scalar_lea.sflag [#allocation4], %s1114_s30  ;;  %s841_s26 = scalar_lea.vmem %s1189_s9, 2048 }
  0x5e   : > { %681 = vmatmul.mubr.msk.f32.vlgmr.msra.gmra.mrb[0].mxu0 %vm240_vm0, %v225_v3  ;;  %695 = vmatmul.mubr.msk.f32.vlgmr.msra.gmra.mrb[0].mxu1 %vm240_vm0, %v225_v3  ;;  %p842_p4 = scmp.ne.s32.totalorder %s1189_s9, %s841_s26  ;;  %s933_s21 = smov [#allocation7]  }
  0x5f   : > { %683 = vmatprep.mubr.msk.f32.mxu0 %vm240_vm0, %v226_v4  ;;  %697 = vmatprep.mubr.msk.f32.mxu1 %vm240_vm0, %v226_v4  ;;  %s845_s4 = sshll.u32 %s933_s21, 4  ;;  %s846_s4 = int_to_ptr.vmem [resolvable:$false] %s845_s4 }
  0x60   : > { %p843_p6 = pnand %p842_p4, %p1055_p10  ;;  %s847_s6 = scalar_lea.vmem %s846_s4, 4096 }
  0x61   : > { %p848_p12 = scmp.lt.s32.totalorder %s1189_s9, %s846_s4  ;;  %p849_p11 = scmp.lt.s32.totalorder %s847_s6, %s841_s26 }
  0x62   : > { %684 = vmatmul.mubr.msk.f32.gmra.mrb[2].mxu0 %vm240_vm0, %v227_v5  ;;  %698 = vmatmul.mubr.msk.f32.gmra.mrb[2].mxu1 %vm240_vm0, %v227_v5  ;;  %p844_p8 = pneg %p843_p6 }
  0x63   : > { %686 = vmatprep.mubr.msk.f32.mxu0 %vm240_vm0, %v228_v6  ;;  %700 = vmatprep.mubr.msk.f32.mxu1 %vm240_vm0, %v228_v6  ;;  %p850_p0 = por %p849_p11, %p848_p12 }
  0x65   : > { %p851_p5 = pnand %p850_p0, %p844_p8 }
  0x66   : > { %687 = vmatmul.mubr.msk.f32.gmra.mrb[4].mxu0 %vm240_vm0, %v229_v7  ;;  %701 = vmatmul.mubr.msk.f32.gmra.mrb[4].mxu1 %vm240_vm0, %v229_v7 }
  0x67   : > { %689 = vmatprep.mubr.msk.f32.mxu0 %vm240_vm0, %v230_v8  ;;  %703 = vmatprep.mubr.msk.f32.mxu1 %vm240_vm0, %v230_v8 }
  0x6a   : > { %690 = vmatmul.mubr.msk.f32.gmra.mrb[6].mxu0 %vm240_vm0, %v231_v9  ;;  %704 = vmatmul.mubr.msk.f32.gmra.mrb[6].mxu1 %vm240_vm0, %v231_v9 }
 0x131   : > { %v682_v11 = vpop.f32.mrb[0].mxu0  ;;  %v696_v12 = vpop.f32.mrb[0].mxu1 }
 0x132   : > { %v337_v13 = vadd.f32 %v682_v11, %v627_v10  ;;  %v459_v14 = vadd.f32 %v696_v12, %v627_v10  ;;  %v331_v15 = vpop.f32.mrb[1].mxu0  ;;  %v453_v16 = vpop.f32.mrb[1].mxu1 }
 0x133   : > { %v332_v17 = vadd.f32 %v627_v10, %v331_v15  ;;  %v454_v18 = vadd.f32 %v627_v10, %v453_v16 }
 0x134   : > { %371 = vst.msk [vmem:[%s1156_s10 + $0x10] sm:$0xff] %vm240_vm0, %v337_v13  ;;  %646 = vst.msk [vmem:[%s1156_s10 + $0x18] sm:$0xff] %vm240_vm0, %v459_v14 }
 0x135   : > { %370 = vst.msk [vmem:[%s1156_s10] sm:$0xff] %vm240_vm0, %v332_v17  ;;  %645 = vst.msk [vmem:[%s1156_s10 + $0x8] sm:$0xff] %vm240_vm0, %v454_v18  ;;  %v685_v19 = vpop.f32.mrb[2].mxu0  ;;  %v699_v20 = vpop.f32.mrb[2].mxu1 }
 0x136   : > { %v347_v21 = vadd.f32 %v685_v19, %v627_v10  ;;  %v469_v22 = vadd.f32 %v699_v20, %v627_v10  ;;  %v341_v23 = vpop.f32.mrb[3].mxu0  ;;  %v463_v24 = vpop.f32.mrb[3].mxu1 }
 0x137   : > { %v342_v25 = vadd.f32 %v627_v10, %v341_v23  ;;  %v464_v26 = vadd.f32 %v627_v10, %v463_v24 }
 0x138   : > { %373 = vst.msk [vmem:[%s1156_s10 + $0x30] sm:$0xff] %vm240_vm0, %v347_v21  ;;  %648 = vst.msk [vmem:[%s1156_s10 + $0x38] sm:$0xff] %vm240_vm0, %v469_v22 }
 0x139   : > { %372 = vst.msk [vmem:[%s1156_s10 + $0x20] sm:$0xff] %vm240_vm0, %v342_v25  ;;  %647 = vst.msk [vmem:[%s1156_s10 + $0x28] sm:$0xff] %vm240_vm0, %v464_v26  ;;  %v688_v27 = vpop.f32.mrb[4].mxu0  ;;  %v702_v28 = vpop.f32.mrb[4].mxu1 }
 0x13a   : > { %v357_v29 = vadd.f32 %v688_v27, %v627_v10  ;;  %v479_v30 = vadd.f32 %v702_v28, %v627_v10  ;;  %v351_v31 = vpop.f32.mrb[5].mxu0  ;;  %v473_v32 = vpop.f32.mrb[5].mxu1 }
 0x13b   : > { %v352_v33 = vadd.f32 %v627_v10, %v351_v31  ;;  %v474_v34 = vadd.f32 %v627_v10, %v473_v32 }
 0x13c   : > { %375 = vst.msk [vmem:[%s1156_s10 + $0x50] sm:$0xff] %vm240_vm0, %v357_v29  ;;  %650 = vst.msk [vmem:[%s1156_s10 + $0x58] sm:$0xff] %vm240_vm0, %v479_v30 }
 0x13d   : > { %374 = vst.msk [vmem:[%s1156_s10 + $0x40] sm:$0xff] %vm240_vm0, %v352_v33  ;;  %649 = vst.msk [vmem:[%s1156_s10 + $0x48] sm:$0xff] %vm240_vm0, %v474_v34  ;;  %v691_v35 = vpop.f32.mrb[6].mxu0  ;;  %v705_v36 = vpop.f32.mrb[6].mxu1 }
 0x13e   : > { %v367_v37 = vadd.f32 %v691_v35, %v627_v10  ;;  %v489_v38 = vadd.f32 %v705_v36, %v627_v10  ;;  %v361_v39 = vpop.f32.mrb[7].mxu0  ;;  %v483_v40 = vpop.f32.mrb[7].mxu1 }
 0x13f   : > { %v362_v41 = vadd.f32 %v627_v10, %v361_v39  ;;  %v484_v42 = vadd.f32 %v627_v10, %v483_v40 }
 0x140   : > { %377 = vst.msk [vmem:[%s1156_s10 + $0x70] sm:$0xff] %vm240_vm0, %v367_v37  ;;  %652 = vst.msk [vmem:[%s1156_s10 + $0x78] sm:$0xff] %vm240_vm0, %v489_v38 }
 0x141   : > { %376 = vst.msk [vmem:[%s1156_s10 + $0x60] sm:$0xff] %vm240_vm0, %v362_v41  ;;  %651 = vst.msk [vmem:[%s1156_s10 + $0x68] sm:$0xff] %vm240_vm0, %v484_v42 }
 0x142   : > { %854 = shalt.err (!%p851_p5)
}
 0x143   : > { %s855_s29 = scalar_lea.hbm %s1187_s19, 2048  ;;  %s859_s20 = scalar_lea.hbm %s1249_s3, 4096 }
 0x144   : > { %p856_p9 = scmp.ne.s32.totalorder %s1187_s19, %s855_s29  ;;  %p860_p3 = scmp.lt.u32.totalorder %s1187_s19, %s1249_s3 }
 0x145   : > { %p861_p7 = scmp.lt.u32.totalorder %s859_s20, %s855_s29  ;;  %p863_p4 = scmp.lt.u32.totalorder %s855_s29, %s1187_s19 }
 0x146   : > { %p857_p1 = pnand %p856_p9, %p1055_p10 }
 0x147   : > { %p862_p13 = por %p861_p7, %p860_p3 }
 0x148   : > { %p858_p2 = pneg %p857_p1 }
 0x149   : > { %p864_p6 = por %p863_p4, %p862_p13 }
 0x14b   : > { %p865_p8 = pnand %p864_p6, %p858_p2 }
 0x14d   : > { %868 = shalt.err (!%p865_p8)
}
 0x14e   : > { %s934_s10 = smov 128   ;;  %s935_s11 = smov 8  }
 0x14f   : > { %712 = dma.vmem_to_hbm [thread:$0]  (%p1055_p10), %s1189_s9, 2048, %s1187_s19, %s502_s25, %s934_s10, %s934_s10, %s935_s11  }
 0x150 PF: > { %s533_s15 = sand.u32 1, %s907_s12   ;;  %p1267_p12 = scmp.ne.s32.totalorder %s1257_s23, 0 }
 0x151   : > { %p1268_p11 = scmp.ge.s32.totalorder %s927_s17, 2  ;;  %s534_s18 = scalar_lea.sflag [#allocation4], %s533_s15 }
 0x153   : > { %p723_p0 = pnand %p1268_p11, %p1267_p12 }
 0x155   : > { %902 = dma.done.wait (!%p723_p0), %s534_s18, 2048  }
 0x156   : > { %904 = vsyncadd (!%p723_p0), %s534_s18, 4294965248  ;;  %s20_s17 = sadd.s32 1, %s927_s17   ;;  %s1269_s12 = smov %s911_s13 }
 0x157   : > { %p17_p5 = scmp.ge.s32.totalorder %s20_s17, 4   ;;  %s1270_s13 = smov %s915_s14 }
 0x158   : > { %s1271_s14 = smov %s1064_s5  ;;  %s1272_s15 = smov %s923_s16 }
 0x159   : > { %s1273_s16 = smov %s1275_s28  ;;  %19 = sbr.rel (!%p17_p5) target bundleno = 7 (0x7), region = 83 }
 0x160   :  { %539 = vsyncpa [#allocation3], 1 }
 0x161   :  { %541 = vsyncpa [#allocation3 + $0x1], 1 }
 0x162   :  { %542 = vsyncpa [#allocation6], 1 }
 0x163   :  { %543 = vsyncpa [#allocation4], 1 }
 0x164   :  { %545 = vsyncpa [#allocation4 + $0x1], 1 }

</bundles_post_ra>
